<compile_context>
chip_gen: v7x
topology: tpu7x:2x2x1
jax: 0.10.0
libtpu: 0.0.40
codegen_flags: <defaults>
</compile_context>

<pallas_src>
import jax
import jax.numpy as jnp
import numpy as np
from jax import lax
from jax.experimental import pallas as pl
from jax.experimental.pallas import tpu as pltpu

EMB = 32     # emb_size
NSENT = 8    # n  (sentences per passage)
BATCH = 2


def _cats_attention_kernel(xq_ref, xp_ref, wa_ref, w1_ref, b1_ref,
                           w2_ref, b2_ref, w3_ref, b3_ref, out_ref):
    xq = xq_ref[...]                      # (TB, E)
    xp = xp_ref[...]                      # (TB, 2, n, E)
    E = xq.shape[-1]
    scale = 1.0 / jnp.sqrt(jnp.float32(E))

    # --- query-conditioned sentence attention (bilinear q^T W_a s) ------------
    qw = jnp.dot(xq, wa_ref[...], preferred_element_type=jnp.float32)   # (TB, E) MXU

    def pool(xp_p):                       # (TB, n, E) -> (TB, E)
        s = jnp.sum(xp_p * qw[:, None, :], axis=-1) * scale             # (TB, n)
        a = jax.nn.softmax(s, axis=-1)
        return jnp.sum(a[:, :, None] * xp_p, axis=1)                    # (TB, E)

    p1 = pool(xp[:, 0])                   # passage split is a free leading-dim slice
    p2 = pool(xp[:, 1])

    # --- CATS pairwise scorer -------------------------------------------------
    # LL1 as a single K=5E MXU matmul over the concatenated features.
    zd = jnp.concatenate(
        [xq, p1, p2, jnp.abs(p1 - xq), jnp.abs(p2 - xq)], axis=-1)       # (TB, 5E)
    z = jnp.dot(zd, w1_ref[...], preferred_element_type=jnp.float32) + b1_ref[...]
    z = jnp.maximum(z, 0.0)
    z = jnp.dot(z, w2_ref[...], preferred_element_type=jnp.float32) + b2_ref[...]
    z = jnp.maximum(z, 0.0)
    # LL3: contract w3 (1,E) with z (TB,E) along E -> (1, TB) lane-dense row.
    scores = lax.dot_general(w3_ref[...], z,
                             dimension_numbers=(((1,), (1,)), ((), ())),
                             preferred_element_type=jnp.float32)
    out_ref[...] = (scores + b3_ref[0]).astype(out_ref.dtype)            # (1, TB)


def cats_sentence_forward(xq, xp, params, *, block_b=1024):
    """Xq: (B, E), Xp: (B, 2, n, E) -> pair_scores (B, 1)."""
    B, E = xq.shape
    n = xp.shape[2]
    wa, w1t, b1, w2t, b2, w3, b3 = params

    # Batch tile: >= 8 (f32 sublane). If the batch is tiled (grid > 1) keep the
    # tile a multiple of 128 so the (1, tb) output block is lane-aligned.
    b_ceil8 = ((B + 7) // 8) * 8
    tb = min(block_b, b_ceil8)
    b_pad = ((B + tb - 1) // tb) * tb
    if b_pad != B:
        xq = jnp.pad(xq, ((0, b_pad - B), (0, 0)))
        xp = jnp.pad(xp, ((0, b_pad - B), (0, 0), (0, 0), (0, 0)))

    def wspec(shape):  # weight block, constant index_map -> stays VMEM-resident
        return pl.BlockSpec(shape, lambda i, _nd=len(shape): (0,) * _nd)

    out = pl.pallas_call(
        _cats_attention_kernel,
        out_shape=jax.ShapeDtypeStruct((1, b_pad), jnp.float32),
        grid_spec=pltpu.PrefetchScalarGridSpec(
            num_scalar_prefetch=0,
            grid=(b_pad // tb,),
            in_specs=[
                pl.BlockSpec((tb, E), lambda i: (i, 0)),            # Xq tile
                pl.BlockSpec((tb, 2, n, E), lambda i: (i, 0, 0, 0)),  # Xp tile
                wspec((E, E)),          # Wa
                wspec((5 * E, E)),      # W1^T (in, out)
                wspec((1, E)),          # b1
                wspec((E, E)),          # W2^T
                wspec((1, E)),          # b2
                wspec((1, E)),          # W3 row (out=1, in=E)
                pl.BlockSpec(memory_space=pltpu.MemorySpace.SMEM),  # b3 scalar
            ],
            out_specs=pl.BlockSpec((1, tb), lambda i: (0, i)),       # lane-dense
        ),
        compiler_params=pltpu.CompilerParams(
            dimension_semantics=("parallel",)),
    )(xq, xp, wa, w1t, b1, w2t, b2, w3, b3)
    return out[0, :B, None]                                          # (B, 1)


def _init_params(key, E):
    ks = jax.random.split(key, 7)
    wa = jax.random.normal(ks[0], (E, E), jnp.float32) / np.sqrt(E)
    # nn.Linear(5E, E), nn.Linear(E, E): pass transposed (in, out).
    w1t = jax.random.normal(ks[1], (5 * E, E), jnp.float32) / np.sqrt(5 * E)
    b1 = jax.random.normal(ks[2], (1, E), jnp.float32) * 0.01
    w2t = jax.random.normal(ks[3], (E, E), jnp.float32) / np.sqrt(E)
    b2 = jax.random.normal(ks[4], (1, E), jnp.float32) * 0.01
    # nn.Linear(E, 1): keep PyTorch (out, in) = (1, E) row layout.
    w3 = jax.random.normal(ks[5], (1, E), jnp.float32) / np.sqrt(E)
    b3 = jax.random.normal(ks[6], (1,), jnp.float32) * 0.01
    return (wa, w1t, b1, w2t, b2, w3, b3)


def _reference(xq, xp, params):
    """Pure-JAX reference of the same forward (for sanity checking)."""
    wa, w1t, b1, w2t, b2, w3, b3 = params
    E = xq.shape[-1]
    qw = xq @ wa

    def pool(p):
        s = jnp.einsum('bne,be->bn', p, qw) / np.sqrt(E)
        a = jax.nn.softmax(s, axis=-1)
        return jnp.einsum('bn,bne->be', a, p)

    p1, p2 = pool(xp[:, 0]), pool(xp[:, 1])
    zd = jnp.concatenate([xq, p1, p2, jnp.abs(p1 - xq), jnp.abs(p2 - xq)], axis=-1)
    z = jnp.maximum(zd @ w1t + b1, 0.0)
    z = jnp.maximum(z @ w2t + b2, 0.0)
    return z @ w3.T + b3


if __name__ == "__main__":
    key = jax.random.PRNGKey(0)
    k_q, k_p, k_w, k_q2, k_p2 = jax.random.split(key, 5)
    params = _init_params(k_w, EMB)

    # small-shape check (single tile, padded batch 2 -> 8)
    xq = jax.random.normal(k_q, (BATCH, EMB), jnp.float32)
    xp = jax.random.normal(k_p, (BATCH, 2, NSENT, EMB), jnp.float32)
    pair_scores = jax.block_until_ready(cats_sentence_forward(xq, xp, params))
    ref = jax.block_until_ready(_reference(xq, xp, params))
    np.testing.assert_allclose(np.asarray(pair_scores), np.asarray(ref),
                               rtol=1e-3, atol=1e-3)

    # batched multi-tile check (grid > 1, tail padding, lane-dense output tiles)
    B2 = 300
    xq2 = jax.random.normal(k_q2, (B2, EMB), jnp.float32)
    xp2 = jax.random.normal(k_p2, (B2, 2, NSENT, EMB), jnp.float32)
    got2 = jax.block_until_ready(
        cats_sentence_forward(xq2, xp2, params, block_b=128))
    ref2 = jax.block_until_ready(_reference(xq2, xp2, params))
    np.testing.assert_allclose(np.asarray(got2), np.asarray(ref2),
                               rtol=1e-3, atol=1e-3)

    print("KERNEL_OK")
</pallas_src>

<mosaic_0001>
module attributes {stable_mosaic.version = 11 : i64} {
  func.func @_cats_attention_kernel(%arg0: i32, %arg1: memref<8x32xf32, #tpu.memory_space<vmem>>, %arg2: memref<8x2x8x32xf32, #tpu.memory_space<vmem>>, %arg3: memref<32x32xf32, #tpu.memory_space<vmem>>, %arg4: memref<160x32xf32, #tpu.memory_space<vmem>>, %arg5: memref<1x32xf32, #tpu.memory_space<vmem>>, %arg6: memref<32x32xf32, #tpu.memory_space<vmem>>, %arg7: memref<1x32xf32, #tpu.memory_space<vmem>>, %arg8: memref<1x32xf32, #tpu.memory_space<vmem>>, %arg9: memref<1xf32, #tpu.memory_space<smem>>, %arg10: memref<1x8xf32, #tpu.memory_space<vmem>>) attributes {dimension_semantics = [#tpu.dimension_semantics<parallel>], iteration_bounds = array<i64: 1>, scalar_prefetch = 0 : i64, scratch_operands = 0 : i64, tpu.core_type = #tpu.core_type<tc>, window_params = [{transform_indices = @transform_0, window_bounds = array<i64: 8, 32>}, {transform_indices = @transform_1, window_bounds = array<i64: 8, 2, 8, 32>}, {pipeline_mode = #tpu.pipeline_mode<synchronous>, transform_indices = @transform_2, window_bounds = array<i64: 32, 32>}, {pipeline_mode = #tpu.pipeline_mode<synchronous>, transform_indices = @transform_3, window_bounds = array<i64: 160, 32>}, {pipeline_mode = #tpu.pipeline_mode<synchronous>, transform_indices = @transform_4, window_bounds = array<i64: 1, 32>}, {pipeline_mode = #tpu.pipeline_mode<synchronous>, transform_indices = @transform_5, window_bounds = array<i64: 32, 32>}, {pipeline_mode = #tpu.pipeline_mode<synchronous>, transform_indices = @transform_6, window_bounds = array<i64: 1, 32>}, {pipeline_mode = #tpu.pipeline_mode<synchronous>, transform_indices = @transform_7, window_bounds = array<i64: 1, 32>}, {transform_indices = @transform_8, window_bounds = array<i64: 1>}, {transform_indices = @transform_9, window_bounds = array<i64: 1, 8>}]} {
    %c0 = arith.constant 0 : index
    %c0_0 = arith.constant 0 : index
    %0 = vector.load %arg1[%c0, %c0_0] : memref<8x32xf32, #tpu.memory_space<vmem>>, vector<8x32xf32>
    %c0_1 = arith.constant 0 : index
    %c0_2 = arith.constant 0 : index
    %c0_3 = arith.constant 0 : index
    %c0_4 = arith.constant 0 : index
    %1 = vector.load %arg2[%c0_1, %c0_2, %c0_3, %c0_4] : memref<8x2x8x32xf32, #tpu.memory_space<vmem>>, vector<8x2x8x32xf32>
    %cst = arith.constant 3.200000e+01 : f32
    %2 = math.sqrt %cst : f32
    %cst_5 = arith.constant 1.000000e+00 : f32
    %3 = arith.divf %cst_5, %2 : f32
    %c0_6 = arith.constant 0 : index
    %c0_7 = arith.constant 0 : index
    %4 = vector.load %arg3[%c0_6, %c0_7] : memref<32x32xf32, #tpu.memory_space<vmem>>, vector<32x32xf32>
    %cst_8 = arith.constant dense<0.000000e+00> : vector<8x32xf32>
    %5 = tpu.matmul %0, %4, %cst_8 {dimension_numbers = #tpu.dot_dimension_numbers<[1], [0], [0], [1], [0, 0, 1, 1], [], []>} : vector<8x32xf32>, vector<32x32xf32>, vector<8x32xf32> -> vector<8x32xf32>
    %6 = vector.extract_strided_slice %1 {offsets = [0, 0, 0, 0], sizes = [8, 1, 8, 32], strides = [1, 1, 1, 1]} : vector<8x2x8x32xf32> to vector<8x1x8x32xf32>
    %7 = vector.shape_cast %6 : vector<8x1x8x32xf32> to vector<8x8x32xf32>
    %8 = vector.shape_cast %5 : vector<8x32xf32> to vector<8x1x32xf32>
    %9 = vector.broadcast %8 : vector<8x1x32xf32> to vector<8x8x32xf32>
    %10 = arith.mulf %7, %9 : vector<8x8x32xf32>
    %cst_9 = arith.constant dense<0.000000e+00> : vector<8x8xf32>
    %11 = vector.multi_reduction <add>, %10, %cst_9 [2] : vector<8x8x32xf32> to vector<8x8xf32>
    %12 = vector.broadcast %3 : f32 to vector<8x8xf32>
    %13 = arith.mulf %11, %12 : vector<8x8xf32>
    %cst_10 = arith.constant dense<0xFF800000> : vector<8xf32>
    %14 = vector.multi_reduction <maximumf>, %13, %cst_10 [1] : vector<8x8xf32> to vector<8xf32>
    %cst_11 = arith.constant 0xFF800000 : f32
    %15 = vector.broadcast %cst_11 : f32 to vector<8xf32>
    %16 = arith.maximumf %15, %14 : vector<8xf32>
    %17 = vector.shape_cast %16 : vector<8xf32> to vector<8x1xf32>
    %18 = vector.broadcast %17 : vector<8x1xf32> to vector<8x8xf32>
    %19 = arith.subf %13, %18 : vector<8x8xf32>
    %20 = math.exp %19 : vector<8x8xf32>
    %cst_12 = arith.constant dense<0.000000e+00> : vector<8xf32>
    %21 = vector.multi_reduction <add>, %20, %cst_12 [1] : vector<8x8xf32> to vector<8xf32>
    %22 = vector.shape_cast %21 : vector<8xf32> to vector<8x1xf32>
    %23 = vector.broadcast %22 : vector<8x1xf32> to vector<8x8xf32>
    %24 = arith.divf %20, %23 : vector<8x8xf32>
    %25 = vector.shape_cast %24 : vector<8x8xf32> to vector<8x8x1xf32>
    %26 = vector.broadcast %25 : vector<8x8x1xf32> to vector<8x8x32xf32>
    %27 = arith.mulf %26, %7 : vector<8x8x32xf32>
    %cst_13 = arith.constant dense<0.000000e+00> : vector<8x32xf32>
    %28 = vector.multi_reduction <add>, %27, %cst_13 [1] : vector<8x8x32xf32> to vector<8x32xf32>
    %29 = vector.extract_strided_slice %1 {offsets = [0, 1, 0, 0], sizes = [8, 1, 8, 32], strides = [1, 1, 1, 1]} : vector<8x2x8x32xf32> to vector<8x1x8x32xf32>
    %30 = vector.shape_cast %29 : vector<8x1x8x32xf32> to vector<8x8x32xf32>
    %31 = vector.shape_cast %5 : vector<8x32xf32> to vector<8x1x32xf32>
    %32 = vector.broadcast %31 : vector<8x1x32xf32> to vector<8x8x32xf32>
    %33 = arith.mulf %30, %32 : vector<8x8x32xf32>
    %cst_14 = arith.constant dense<0.000000e+00> : vector<8x8xf32>
    %34 = vector.multi_reduction <add>, %33, %cst_14 [2] : vector<8x8x32xf32> to vector<8x8xf32>
    %35 = vector.broadcast %3 : f32 to vector<8x8xf32>
    %36 = arith.mulf %34, %35 : vector<8x8xf32>
    %cst_15 = arith.constant dense<0xFF800000> : vector<8xf32>
    %37 = vector.multi_reduction <maximumf>, %36, %cst_15 [1] : vector<8x8xf32> to vector<8xf32>
    %cst_16 = arith.constant 0xFF800000 : f32
    %38 = vector.broadcast %cst_16 : f32 to vector<8xf32>
    %39 = arith.maximumf %38, %37 : vector<8xf32>
    %40 = vector.shape_cast %39 : vector<8xf32> to vector<8x1xf32>
    %41 = vector.broadcast %40 : vector<8x1xf32> to vector<8x8xf32>
    %42 = arith.subf %36, %41 : vector<8x8xf32>
    %43 = math.exp %42 : vector<8x8xf32>
    %cst_17 = arith.constant dense<0.000000e+00> : vector<8xf32>
    %44 = vector.multi_reduction <add>, %43, %cst_17 [1] : vector<8x8xf32> to vector<8xf32>
    %45 = vector.shape_cast %44 : vector<8xf32> to vector<8x1xf32>
    %46 = vector.broadcast %45 : vector<8x1xf32> to vector<8x8xf32>
    %47 = arith.divf %43, %46 : vector<8x8xf32>
    %48 = vector.shape_cast %47 : vector<8x8xf32> to vector<8x8x1xf32>
    %49 = vector.broadcast %48 : vector<8x8x1xf32> to vector<8x8x32xf32>
    %50 = arith.mulf %49, %30 : vector<8x8x32xf32>
    %cst_18 = arith.constant dense<0.000000e+00> : vector<8x32xf32>
    %51 = vector.multi_reduction <add>, %50, %cst_18 [1] : vector<8x8x32xf32> to vector<8x32xf32>
    %52 = arith.subf %28, %0 : vector<8x32xf32>
    %53 = math.absf %52 : vector<8x32xf32>
    %54 = arith.subf %51, %0 : vector<8x32xf32>
    %55 = math.absf %54 : vector<8x32xf32>
    %56 = tpu.concatenate %0, %28, %51, %53, %55 in 1 : vector<8x32xf32>, vector<8x32xf32>, vector<8x32xf32>, vector<8x32xf32>, vector<8x32xf32> -> vector<8x160xf32>
    %c0_19 = arith.constant 0 : index
    %c0_20 = arith.constant 0 : index
    %57 = vector.load %arg4[%c0_19, %c0_20] : memref<160x32xf32, #tpu.memory_space<vmem>>, vector<160x32xf32>
    %cst_21 = arith.constant dense<0.000000e+00> : vector<8x32xf32>
    %58 = tpu.matmul %56, %57, %cst_21 {dimension_numbers = #tpu.dot_dimension_numbers<[1], [0], [0], [1], [0, 0, 1, 1], [], []>} : vector<8x160xf32>, vector<160x32xf32>, vector<8x32xf32> -> vector<8x32xf32>
    %c0_22 = arith.constant 0 : index
    %c0_23 = arith.constant 0 : index
    %59 = vector.load %arg5[%c0_22, %c0_23] : memref<1x32xf32, #tpu.memory_space<vmem>>, vector<1x32xf32>
    %60 = vector.broadcast %59 : vector<1x32xf32> to vector<8x32xf32>
    %61 = arith.addf %58, %60 : vector<8x32xf32>
    %cst_24 = arith.constant 0.000000e+00 : f32
    %62 = vector.broadcast %cst_24 : f32 to vector<8x32xf32>
    %63 = arith.maximumf %61, %62 : vector<8x32xf32>
    %c0_25 = arith.constant 0 : index
    %c0_26 = arith.constant 0 : index
    %64 = vector.load %arg6[%c0_25, %c0_26] : memref<32x32xf32, #tpu.memory_space<vmem>>, vector<32x32xf32>
    %cst_27 = arith.constant dense<0.000000e+00> : vector<8x32xf32>
    %65 = tpu.matmul %63, %64, %cst_27 {dimension_numbers = #tpu.dot_dimension_numbers<[1], [0], [0], [1], [0, 0, 1, 1], [], []>} : vector<8x32xf32>, vector<32x32xf32>, vector<8x32xf32> -> vector<8x32xf32>
    %c0_28 = arith.constant 0 : index
    %c0_29 = arith.constant 0 : index
    %66 = vector.load %arg7[%c0_28, %c0_29] : memref<1x32xf32, #tpu.memory_space<vmem>>, vector<1x32xf32>
    %67 = vector.broadcast %66 : vector<1x32xf32> to vector<8x32xf32>
    %68 = arith.addf %65, %67 : vector<8x32xf32>
    %cst_30 = arith.constant 0.000000e+00 : f32
    %69 = vector.broadcast %cst_30 : f32 to vector<8x32xf32>
    %70 = arith.maximumf %68, %69 : vector<8x32xf32>
    %c0_31 = arith.constant 0 : index
    %c0_32 = arith.constant 0 : index
    %71 = vector.load %arg8[%c0_31, %c0_32] : memref<1x32xf32, #tpu.memory_space<vmem>>, vector<1x32xf32>
    %cst_33 = arith.constant dense<0.000000e+00> : vector<1x8xf32>
    %72 = tpu.matmul %71, %70, %cst_33 {dimension_numbers = #tpu.dot_dimension_numbers<[1], [1], [0], [0], [0, 0, 1, 0], [], []>} : vector<1x32xf32>, vector<8x32xf32>, vector<1x8xf32> -> vector<1x8xf32>
    %c0_34 = arith.constant 0 : index
    %73 = memref.load %arg9[%c0_34] : memref<1xf32, #tpu.memory_space<smem>>
    %74 = vector.broadcast %73 : f32 to vector<1x8xf32>
    %75 = arith.addf %72, %74 : vector<1x8xf32>
    %c0_35 = arith.constant 0 : index
    %c0_36 = arith.constant 0 : index
    %76 = vector.load %arg10[%c0_35, %c0_36] : memref<1x8xf32, #tpu.memory_space<vmem>>, vector<1x8xf32>
    tpu.vector_store %arg10[%c0_35, %c0_36], %75 {strides = array<i32>} : memref<1x8xf32, #tpu.memory_space<vmem>>, vector<1x8xf32>,
    return
  }
  func.func @transform_0(%arg0: i32) -> (i32, i32) {
    %c0_i32 = arith.constant 0 : i32
    %c0_i32_0 = arith.constant 0 : i32
    return %arg0, %c0_i32 : i32, i32
  }
  func.func @transform_1(%arg0: i32) -> (i32, i32, i32, i32) {
    %c0_i32 = arith.constant 0 : i32
    %c0_i32_0 = arith.constant 0 : i32
    %c0_i32_1 = arith.constant 0 : i32
    %c0_i32_2 = arith.constant 0 : i32
    return %arg0, %c0_i32, %c0_i32_0, %c0_i32_1 : i32, i32, i32, i32
  }
  func.func @transform_2(%arg0: i32) -> (i32, i32) {
    %c0_i32 = arith.constant 0 : i32
    %c0_i32_0 = arith.constant 0 : i32
    %c0_i32_1 = arith.constant 0 : i32
    return %c0_i32, %c0_i32_0 : i32, i32
  }
  func.func @transform_3(%arg0: i32) -> (i32, i32) {
    %c0_i32 = arith.constant 0 : i32
    %c0_i32_0 = arith.constant 0 : i32
    %c0_i32_1 = arith.constant 0 : i32
    return %c0_i32, %c0_i32_0 : i32, i32
  }
  func.func @transform_4(%arg0: i32) -> (i32, i32) {
    %c0_i32 = arith.constant 0 : i32
    %c0_i32_0 = arith.constant 0 : i32
    %c0_i32_1 = arith.constant 0 : i32
    return %c0_i32, %c0_i32_0 : i32, i32
  }
  func.func @transform_5(%arg0: i32) -> (i32, i32) {
    %c0_i32 = arith.constant 0 : i32
    %c0_i32_0 = arith.constant 0 : i32
    %c0_i32_1 = arith.constant 0 : i32
    return %c0_i32, %c0_i32_0 : i32, i32
  }
  func.func @transform_6(%arg0: i32) -> (i32, i32) {
    %c0_i32 = arith.constant 0 : i32
    %c0_i32_0 = arith.constant 0 : i32
    %c0_i32_1 = arith.constant 0 : i32
    return %c0_i32, %c0_i32_0 : i32, i32
  }
  func.func @transform_7(%arg0: i32) -> (i32, i32) {
    %c0_i32 = arith.constant 0 : i32
    %c0_i32_0 = arith.constant 0 : i32
    %c0_i32_1 = arith.constant 0 : i32
    return %c0_i32, %c0_i32_0 : i32, i32
  }
  func.func @transform_8(%arg0: i32) -> i32 {
    %c0_i32 = arith.constant 0 : i32
    %c0_i32_0 = arith.constant 0 : i32
    return %c0_i32 : i32
  }
  func.func @transform_9(%arg0: i32) -> (i32, i32) {
    %c0_i32 = arith.constant 0 : i32
    %c0_i32_0 = arith.constant 0 : i32
    return %c0_i32, %arg0 : i32, i32
  }
}

</mosaic_0001>

<bundles_post_ra>
// kernel: tpu_custom_call.1
= control target key start
LH: loop header
LB: loop body
LE: loop exit
PB: predicated region body
PF: predicated region fallthrough
CT: control target
= control target key end

     0   :  { %v1617_v3 = vmov 0.0|0.0   ;;  %vm1618_vm0 = vmmov 0   ;;  %v1619_v6 = vmov 0.0   ;;  %s2315_s0 = inlined_call_operand.vmem [shape: f32[8,32], index: 0, kind: input, shape index: {}]   ;;  %s2316_s1 = inlined_call_operand.vmem [shape: f32[8,2,8,32], index: 1, kind: input, shape index: {}]   ;;  %s2317_s2 = inlined_call_operand.vmem [shape: f32[32,32], index: 2, kind: input, shape index: {}]   ;;  %s2318_s3 = inlined_call_operand.vmem [shape: f32[160,32], index: 3, kind: input, shape index: {}]   ;;  %s2319_s4 = inlined_call_operand.vmem [shape: f32[1,32], index: 4, kind: input, shape index: {}]   ;;  %s2320_s5 = inlined_call_operand.vmem [shape: f32[32,32], index: 5, kind: input, shape index: {}]   ;;  %s2321_s6 = inlined_call_operand.vmem [shape: f32[1,32], index: 6, kind: input, shape index: {}]   ;;  %s2322_s7 = inlined_call_operand.vmem [shape: f32[1,32], index: 7, kind: input, shape index: {}]   ;;  %s2323_s8 = inlined_call_operand.<no memory space> [shape: f32[1], index: 8, kind: input, shape index: {}]   ;;  %s2324_s9 = inlined_call_operand.hbm [shape: f32[1,8], index: 9, kind: output, shape index: {}]  }
   0x1   :  { %v51_v0 = vld [vmem:[%s2317_s2] sm:$0xff]  ;;  %v52_v1 = vld [vmem:[%s2317_s2 + $0x8] sm:$0xff]  ;;  %v53_v2 = vld [vmem:[%s2317_s2 + $0x10] sm:$0xff]  ;;  %1474 = vmatprep.subr.bf16.mxu0 %v1617_v3  ;;  %1455 = vmatprep.mubr.msk.f32.mxu0 %vm1618_vm0, %v1619_v6 }
   0x2   :  { %v1475_v4 = vpack.c.bf16 %v52_v1, %v51_v0  ;;  %v54_v5 = vld [vmem:[%s2317_s2 + $0x18] sm:$0xff] }
   0x3   :  { %15 = vsyncpa [#allocation4], 0  ;;  %1480 = vmatprep.subr.bf16.mxu1 %v1617_v3  ;;  %v1478_v7 = vpack.c.bf16 %v54_v5, %v53_v2  ;;  %v1696_v8 = vld [vmem:[%s2315_s0] sm:$0xff]  ;;  %vm55_vm1 = vcmask 261120   ;;  %v1620_v9 = vmov 1966171168   ;;  %v134_v11 = vlaneseq }
   0x4   :  { %1476 = vmatpush3.bf16.msra.mxu0 %v1475_v4  ;;  %v132_v10 = vunpack.c.l.s4 %v1620_v9  ;;  %v1713_v27 = vld [vmem:[%s2316_s1 + $0x8] sm:$0xff]  ;;  %v1718_v28 = vld [vmem:[%s2316_s1] sm:$0xff]  ;;  %v1730_v32 = vld [vmem:[%s2316_s1 + $0x10] sm:$0xff]  ;;  %vm301_vm2 = vcmask 1041409   ;;  %vm303_vm3 = vcmask 1042434   ;;  %vm305_vm4 = vcmask 1043459  }
   0x5   :  { %1477 = vmatprep.subr.bf16.mxu0 %v1617_v3  ;;  %v1704_v13 = vshrl.u32 %v134_v11, 7  ;;  %v1724_v30 = vld [vmem:[%s2316_s1 + $0x20] sm:$0xff]  ;;  %v1749_v45 = vld [vmem:[%s2316_s1 + $0x30] sm:$0xff]  ;;  %v1758_v50 = vld [vmem:[%s2316_s1 + $0x18] sm:$0xff]  ;;  %vm307_vm5 = vcmask 1044484   ;;  %vm309_vm6 = vcmask 1045509  }
   0x6   :  { %v133_v12 = vunpack.c.0.s8 %v132_v10  ;;  %v1744_v44 = vld [vmem:[%s2316_s1 + $0x40] sm:$0xff]  ;;  %v1764_v52 = vld [vmem:[%s2316_s1 + $0x50] sm:$0xff]  ;;  %v1773_v58 = vld [vmem:[%s2316_s1 + $0x28] sm:$0xff]  ;;  %vm311_vm7 = vcmask 1046534   ;;  %vm313_vm8 = vcmask 1047559   ;;  %vm316_vm9 = vcmask 64512  }
   0x7   :  { %v1708_v19 = vsub.s32 0, %v1704_v13  ;;  %v1778_v60 = vld [vmem:[%s2316_s1 + $0x38] sm:$0xff]  ;;  %v1789_v4 = vld [vmem:[%s2316_s1 + $0x60] sm:$0xff]  ;;  %v1794_v5 = vld [vmem:[%s2316_s1 + $0x70] sm:$0xff]  ;;  %s1623_s19 = smov 96   ;;  %s1624_s28 = smov 64  }
   0x8   :  { %1479 = vmatpush3.bf16.msra.mxu0 %v1478_v7  ;;  %v136_v14 = vsub.s32 %v133_v12, %v1704_v13  ;;  %vm1144_vm10 = vcmask 523264   ;;  %vm1146_vm11 = vcmask 785408   ;;  %s1625_s2 = smov [#allocation3]   ;;  %vm1412_vm12 = vcmask 57344  }
   0x9   :  { %1510 = vmatprep.subr.bf16.mxu0 %v1617_v3 }
   0xb   :  { %1456 = vmatmul.mubr.msk.f32.vlgmr.msra.gmra.mrb[0].mxu0 %vm55_vm1, %v1696_v8 }
   0xc   :  { %1466 = vmatprep.mubr.msk.f32.mxu0 %vm1618_vm0, %v1619_v6 }
  0xde   :  { %v125_v15 = vpop.f32.mrb[0].mxu0 }
  0xdf   :  { %v130_v16 = vcombine.high %v125_v15, %v125_v15  ;;  %v137_v17 = vrot.slane %v125_v15, %v136_v14  ;;  %v1457_v18 = vpop.f32.mrb[1].mxu0  ;;  %v1808_v15 = vld [vmem:[%s2316_s1 + $0x58] sm:$0xff] }
  0xe1   :  { %v144_v20 = vrot.slane %v130_v16, %v136_v14  ;;  %v145_v21 = vcombine.high %v137_v17, %v137_v17  ;;  %v153_v22 = vrot.slane %v137_v17, %v136_v14 }
  0xe3   :  { %v146_v23 = vcombine.high %v144_v20, %v144_v20  ;;  %v160_v24 = vrot.slane %v144_v20, %v136_v14  ;;  %v167_v25 = vrot.slane %v145_v21, %v136_v14  ;;  %v175_v26 = vcombine.high %v153_v22, %v153_v22  ;;  %v1817_v21 = vld [vmem:[%s2316_s1 + $0x68] sm:$0xff] }
  0xe4   :  { %v182_v29 = vrot.slane %v153_v22, %v1708_v19  ;;  %v50_v22 = vld [vmem:[%s2316_s1 + $0x78] sm:$0xff] }
  0xe5   :  { %v190_v31 = vrot.slane %v175_v26, %v1708_v19  ;;  %v186_v33 = vrot.slane %v167_v25, %v1708_v19  ;;  %v177_v34 = vcombine.high %v167_v25, %v167_v25  ;;  %v198_v38 = vrot.slane %v160_v24, %v1708_v19 }
  0xe6   :  { %v621_v35 = vmul.f32 %v182_v29, %v1713_v27  ;;  %v219_v36 = vmul.f32 %v182_v29, %v1718_v28  ;;  %v174_v39 = vrot.slane %v146_v23, %v136_v14  ;;  %v176_v54 = vcombine.high %v160_v24, %v160_v24  ;;  %v1803_v14 = vld [vmem:[%s2316_s1 + $0x48] sm:$0xff] }
  0xe7   :  { %v221_v37 = vmul.f32 %v190_v31, %v1724_v30  ;;  %v220_v42 = vmul.f32 %v186_v33, %v1730_v32  ;;  %v194_v43 = vrot.slane %v177_v34, %v1708_v19  ;;  %v223_v46 = vmul.f32 %v198_v38, %v1744_v44 }
  0xe8   :  { %v629_v40 = vsel %vm55_vm1, %v621_v35, 0.0  ;;  %v227_v41 = vsel %vm55_vm1, %v219_v36, 0.0  ;;  %v202_v51 = vrot.slane %v174_v39, %v1708_v19  ;;  %v622_v53 = vmul.f32 %v186_v33, %v1758_v50 }
  0xe9   :  { %630 = vadd.xlane.f32.xlu1 %v629_v40  ;;  %228 = vadd.xlane.f32.xlu0 %v227_v41  ;;  %v233_v47 = vsel %vm55_vm1, %v221_v37, 0.0  ;;  %v230_v48 = vsel %vm55_vm1, %v220_v42, 0.0  ;;  %v222_v49 = vmul.f32 %v194_v43, %v1749_v45  ;;  %v239_v56 = vsel %vm55_vm1, %v223_v46, 0.0 }
  0xea   :  { %v224_v57 = vmul.f32 %v202_v51, %v1764_v52  ;;  %v178_v59 = vcombine.high %v174_v39, %v174_v39  ;;  %v632_v61 = vsel %vm55_vm1, %v622_v53, 0.0  ;;  %v623_v62 = vmul.f32 %v190_v31, %v1773_v58 }
  0xeb   :  { %v236_v55 = vsel %vm55_vm1, %v222_v49, 0.0  ;;  %v624_v0 = vmul.f32 %v194_v43, %v1778_v60  ;;  %v206_v1 = vrot.slane %v176_v54, %v1708_v19  ;;  %v625_v18 = vmul.f32 %v198_v38, %v1803_v14 }
  0xec   :  { %v242_v63 = vsel %vm55_vm1, %v224_v57, 0.0  ;;  %v210_v2 = vrot.slane %v178_v59, %v1708_v19  ;;  %v635_v7 = vsel %vm55_vm1, %v623_v62, 0.0  ;;  %v626_v20 = vmul.f32 %v202_v51, %v1808_v15 }
  0xed   :  { %234 = vadd.xlane.f32.xlu1 %v233_v47  ;;  %231 = vadd.xlane.f32.xlu0 %v230_v48  ;;  %v638_v9 = vsel %vm55_vm1, %v624_v0, 0.0  ;;  %v225_v10 = vmul.f32 %v206_v1, %v1789_v4  ;;  %v641_v23 = vsel %vm55_vm1, %v625_v18, 0.0  ;;  %v627_v25 = vmul.f32 %v206_v1, %v1817_v21 }
  0xee   :  { %v226_v12 = vmul.f32 %v210_v2, %v1794_v5  ;;  %v644_v24 = vsel %vm55_vm1, %v626_v20, 0.0  ;;  %v628_v26 = vmul.f32 %v210_v2, %v50_v22  ;;  %v268_v37 = vand.u32 127, %v134_v11 }
  0xef   :  { %v245_v16 = vsel %vm55_vm1, %v225_v10, 0.0  ;;  %v647_v29 = vsel %vm55_vm1, %v627_v25, 0.0 }
  0xf0   :  { %v248_v17 = vsel %vm55_vm1, %v226_v12, 0.0  ;;  %v650_v31 = vsel %vm55_vm1, %v628_v26, 0.0  ;;  %v1831_v41 = vsub.s32 %v268_v37, %v1704_v13 }
  0xf1   :  { %237 = vadd.xlane.f32.xlu1 %v236_v55  ;;  %240 = vadd.xlane.f32.xlu0 %v239_v56 }
  0xf5   :  { %633 = vadd.xlane.f32.xlu0 %v632_v61  ;;  %243 = vadd.xlane.f32.xlu1 %v242_v63 }
  0xf9   :  { %636 = vadd.xlane.f32.xlu0 %v635_v7  ;;  %639 = vadd.xlane.f32.xlu1 %v638_v9 }
  0xfd   :  { %246 = vadd.xlane.f32.xlu0 %v245_v16  ;;  %249 = vadd.xlane.f32.xlu1 %v248_v17 }
 0x101   :  { %642 = vadd.xlane.f32.xlu0 %v641_v23  ;;  %645 = vadd.xlane.f32.xlu1 %v644_v24 }
 0x105   :  { %648 = vadd.xlane.f32.xlu0 %v647_v29  ;;  %651 = vadd.xlane.f32.xlu1 %v650_v31 }
 0x176   :  { %v631_v33 = vpop.xlane.xlu1 %630  ;;  %v229_v34 = vpop.xlane.xlu0 %228 }
 0x177   :  { %v1833_v42 = vmul.f32 0.17677669, %v229_v34  ;;  %v1856_v63 = vmul.f32 0.17677669, %v631_v33 }
 0x179   :  { %v272_v11 = vrot.slane %v1833_v42, %v1831_v41  ;;  %v672_v22 = vrot.slane %v1856_v63, %v1831_v41 }
 0x17a   :  { %v235_v35 = vpop.xlane.xlu1 %234  ;;  %v232_v36 = vpop.xlane.xlu0 %231 }
 0x17b   :  { %v1828_v38 = vmul.f32 0.17677669, %v232_v36  ;;  %v1835_v43 = vmul.f32 0.17677669, %v235_v35 }
 0x17d   :  { %v276_v46 = vrot.slane %v1828_v38, %v1831_v41  ;;  %v280_v51 = vrot.slane %v1835_v43, %v1831_v41 }
 0x17e   :  { %v238_v39 = vpop.xlane.xlu1 %237  ;;  %v241_v40 = vpop.xlane.xlu0 %240 }
 0x17f   :  { %v1839_v47 = vmul.f32 0.17677669, %v238_v39  ;;  %v1845_v53 = vmul.f32 0.17677669, %v241_v40  ;;  %v302_v54 = vsel %vm301_vm2, %v276_v46, %v272_v11 }
 0x180   :  { %v304_v0 = vsel %vm303_vm3, %v280_v51, %v302_v54 }
 0x181   :  { %v284_v55 = vrot.slane %v1839_v47, %v1831_v41  ;;  %v288_v1 = vrot.slane %v1845_v53, %v1831_v41 }
 0x182   :  { %v634_v48 = vpop.xlane.xlu0 %633  ;;  %v244_v49 = vpop.xlane.xlu1 %243 }
 0x183   :  { %v1850_v56 = vmul.f32 0.17677669, %v634_v48  ;;  %v1852_v57 = vmul.f32 0.17677669, %v244_v49  ;;  %v306_v2 = vsel %vm305_vm4, %v284_v55, %v304_v0 }
 0x184   :  { %v308_v23 = vsel %vm307_vm5, %v288_v1, %v306_v2 }
 0x185   :  { %v676_v7 = vrot.slane %v1850_v56, %v1831_v41  ;;  %v292_v9 = vrot.slane %v1852_v57, %v1831_v41 }
 0x186   :  { %v637_v59 = vpop.xlane.xlu0 %636  ;;  %v640_v61 = vpop.xlane.xlu1 %639 }
 0x187   :  { %v1854_v62 = vmul.f32 0.17677669, %v637_v59  ;;  %v1866_v10 = vmul.f32 0.17677669, %v640_v61  ;;  %v701_v26 = vsel %vm301_vm2, %v676_v7, %v672_v22  ;;  %v310_v34 = vsel %vm309_vm6, %v292_v9, %v308_v23 }
 0x188   :  { %v1906_v22 = vsub.s32 2, %v1704_v13  ;;  %v1909_v23 = vsub.s32 7, %v1704_v13 }
 0x189   :  { %v680_v17 = vrot.slane %v1854_v62, %v1831_v41  ;;  %v684_v29 = vrot.slane %v1866_v10, %v1831_v41 }
 0x18a   :  { %v247_v12 = vpop.xlane.xlu0 %246  ;;  %v250_v16 = vpop.xlane.xlu1 %249 }
 0x18b   :  { %v1870_v18 = vmul.f32 0.17677669, %v247_v12  ;;  %v258_v20 = vmul.f32 0.17677669, %v250_v16  ;;  %v702_v35 = vsel %vm303_vm3, %v680_v17, %v701_v26  ;;  %v1621_v16 = vmov 0  }
 0x18c   :  { %v703_v49 = vsel %vm305_vm4, %v684_v29, %v702_v35  ;;  %1526 = vset.pattern.permute.xlu1 %v1621_v16  ;;  %1525 = vset.pattern.permute.xlu0 %v1621_v16  ;;  %v1903_v17 = vsub.s32 1, %v1704_v13 }
 0x18d   :  { %v296_v24 = vrot.slane %v1870_v18, %v1831_v41  ;;  %v300_v25 = vrot.slane %v258_v20, %v1831_v41 }
 0x18e   :  { %v643_v31 = vpop.xlane.xlu0 %642  ;;  %v646_v33 = vpop.xlane.xlu1 %645 }
 0x18f   :  { %v1883_v36 = vmul.f32 0.17677669, %v643_v31  ;;  %v658_v37 = vmul.f32 0.17677669, %v646_v33  ;;  %v312_v39 = vsel %vm311_vm7, %v296_v24, %v310_v34  ;;  %v1912_v24 = vsub.s32 3, %v1704_v13 }
 0x190   :  { %v314_v40 = vsel %vm313_vm8, %v300_v25, %v312_v39  ;;  %v1921_v39 = vsub.s32 4, %v1704_v13 }
 0x191   :  { %v688_v46 = vrot.slane %v1883_v36, %v1831_v41  ;;  %v317_v48 = vsel %vm316_vm9, %v314_v40, -inf  ;;  %v692_v11 = vrot.slane %v658_v37, %v1831_v41 }
 0x192   :  { %v649_v51 = vpop.xlane.xlu0 %648  ;;  %318 = vmax.xlane.f32.xlu0 %v317_v48  ;;  %v652_v54 = vpop.xlane.xlu1 %651 }
 0x193   :  { %v704_v55 = vsel %vm307_vm5, %v688_v46, %v703_v49  ;;  %v1893_v59 = vmul.f32 0.17677669, %v649_v51  ;;  %v660_v61 = vmul.f32 0.17677669, %v652_v54  ;;  %v1926_v51 = vsub.s32 5, %v1704_v13 }
 0x194   :  { %v705_v2 = vsel %vm309_vm6, %v692_v11, %v704_v55 }
 0x195   :  { %v696_v0 = vrot.slane %v1893_v59, %v1831_v41  ;;  %v700_v1 = vrot.slane %v660_v61, %v1831_v41 }
 0x197   :  { %v706_v7 = vsel %vm311_vm7, %v696_v0, %v705_v2 }
 0x198   :  { %v707_v9 = vsel %vm313_vm8, %v700_v1, %v706_v7 }
 0x199   :  { %v709_v12 = vsel %vm316_vm9, %v707_v9, -inf }
 0x19a   :  { %710 = vmax.xlane.f32.xlu1 %v709_v12 }
 0x21f   :  { %v319_v25 = vpop.xlane.xlu0 %318 }
 0x220   :  { %v324_v26 = vrot.slane %v319_v25, %v1708_v19  ;;  %v328_v29 = vrot.slane %v319_v25, %v1903_v17  ;;  %v332_v31 = vrot.slane %v319_v25, %v1906_v22  ;;  %v352_v33 = vrot.slane %v319_v25, %v1909_v23 }
 0x221   :  { %v336_v40 = vrot.slane %v319_v25, %v1912_v24  ;;  %v340_v54 = vrot.slane %v319_v25, %v1921_v39 }
 0x222   :  { %v361_v34 = vsub.f32 %v1833_v42, %v324_v26  ;;  %v362_v35 = vsub.f32 %v1828_v38, %v328_v29  ;;  %v363_v46 = vsub.f32 %v1835_v43, %v332_v31  ;;  %v368_v11 = vsub.f32 %v258_v20, %v352_v33 }
 0x223   :  { %v364_v42 = vsub.f32 %v1839_v47, %v336_v40  ;;  %v1935_v43 = vsub.s32 6, %v1704_v13  ;;  %v344_v20 = vrot.slane %v319_v25, %v1926_v51  ;;  %v365_v7 = vsub.f32 %v1845_v53, %v340_v54 }
 0x224   :  { %v369_v48 = vmul.f32 1.442695, %v361_v34  ;;  %v371_v49 = vmul.f32 1.442695, %v362_v35  ;;  %v373_v38 = vmul.f32 1.442695, %v363_v46 }
 0x225   :  { %v383_v0 = vmul.f32 1.442695, %v368_v11  ;;  %v375_v47 = vmul.f32 1.442695, %v364_v42  ;;  %v348_v13 = vrot.slane %v319_v25, %v1935_v43  ;;  %v366_v29 = vsub.f32 %v1852_v57, %v344_v20 }
 0x226   :  { %1527 = vpow2.f32 %v369_v48  ;;  %v377_v31 = vmul.f32 1.442695, %v365_v7 }
 0x227   :  { %1529 = vpow2.f32 %v371_v49  ;;  %v1930_v55 = vpop.xlane.xlu1 %710  ;;  %v379_v35 = vmul.f32 1.442695, %v366_v29 }
 0x228   :  { %v728_v1 = vrot.slane %v1930_v55, %v1912_v24  ;;  %v736_v2 = vrot.slane %v1930_v55, %v1926_v51  ;;  %1531 = vpow2.f32 %v373_v38  ;;  %v744_v12 = vrot.slane %v1930_v55, %v1909_v23 }
 0x229   :  { %1533 = vpow2.f32 %v383_v0  ;;  %v716_v57 = vrot.slane %v1930_v55, %v1708_v19  ;;  %v720_v48 = vrot.slane %v1930_v55, %v1903_v17  ;;  %v724_v11 = vrot.slane %v1930_v55, %v1906_v22 }
 0x22a   :  { %v756_v9 = vsub.f32 %v1866_v10, %v728_v1  ;;  %v758_v16 = vsub.f32 %v658_v37, %v736_v2  ;;  %1535 = vpow2.f32 %v375_v47  ;;  %v760_v53 = vsub.f32 %v660_v61, %v744_v12 }
 0x22b   :  { %v367_v37 = vsub.f32 %v1870_v18, %v348_v13  ;;  %v753_v18 = vsub.f32 %v1856_v63, %v716_v57  ;;  %v754_v54 = vsub.f32 %v1850_v56, %v720_v48  ;;  %v732_v63 = vrot.slane %v1930_v55, %v1921_v39 }
 0x22c   :  { %v767_v26 = vmul.f32 1.442695, %v756_v9  ;;  %v771_v10 = vmul.f32 1.442695, %v758_v16  ;;  %v775_v40 = vmul.f32 1.442695, %v760_v53  ;;  %v755_v1 = vsub.f32 %v1854_v62, %v724_v11 }
 0x22d   :  { %v381_v61 = vmul.f32 1.442695, %v367_v37  ;;  %v761_v42 = vmul.f32 1.442695, %v753_v18  ;;  %v763_v20 = vmul.f32 1.442695, %v754_v54  ;;  %v740_v56 = vrot.slane %v1930_v55, %v1935_v43 }
 0x22e   :  { %1537 = vpow2.f32 %v767_v26  ;;  %v757_v47 = vsub.f32 %v1883_v36, %v732_v63  ;;  %v765_v9 = vmul.f32 1.442695, %v755_v1 }
 0x22f   :  { %1539 = vpow2.f32 %v377_v31  ;;  %v759_v16 = vsub.f32 %v1893_v59, %v740_v56 }
 0x230   :  { %v1946_v33 = vpop.eup %1527  ;;  %1541 = vpow2.f32 %v771_v10  ;;  %v769_v26 = vmul.f32 1.442695, %v757_v47 }
 0x231   :  { %v1948_v34 = vpop.eup %1529  ;;  %394 = vperm.xlu0 %1525, %v1946_v33   ;;  %1543 = vpow2.f32 %v379_v35  ;;  %v773_v36 = vmul.f32 1.442695, %v759_v16 }
 0x232   :  { %397 = vperm.xlu1 %1526, %v1948_v34   ;;  %v1955_v25 = vpop.eup %1531  ;;  %1545 = vpow2.f32 %v775_v40 }
 0x233   :  { %v1958_v46 = vpop.eup %1533  ;;  %1547 = vpow2.f32 %v381_v61 }
 0x234   :  { %v1964_v49 = vpop.eup %1535  ;;  %1549 = vpow2.f32 %v761_v42 }
 0x235   :  { %415 = vperm.xlu0 %1525, %v1958_v46   ;;  %1551 = vpow2.f32 %v763_v20 }
 0x236   :  { %400 = vperm.xlu1 %1526, %v1955_v25   ;;  %1553 = vpow2.f32 %v765_v9 }
 0x237   :  { %1555 = vpow2.f32 %v769_v26 }
 0x238   :  { %v1970_v38 = vpop.eup %1537  ;;  %1557 = vpow2.f32 %v773_v36 }
 0x239   :  { %v1972_v0 = vpop.eup %1539  ;;  %795 = vperm.xlu0 %1525, %v1970_v38  }
 0x23a   :  { %403 = vperm.xlu1 %1526, %v1964_v49   ;;  %v1979_v2 = vpop.eup %1541 }
 0x23b   :  { %v1981_v7 = vpop.eup %1543 }
 0x23c   :  { %v1988_v12 = vpop.eup %1545 }
 0x23d   :  { %801 = vperm.xlu0 %1525, %v1979_v2   ;;  %v1990_v62 = vpop.eup %1547 }
 0x23e   :  { %406 = vperm.xlu1 %1526, %v1972_v0   ;;  %v1995_v13 = vpop.eup %1549 }
 0x23f   :  { %v1998_v55 = vpop.eup %1551 }
 0x240   :  { %v2001_v29 = vpop.eup %1553 }
 0x241   :  { %807 = vperm.xlu0 %1525, %v1988_v12   ;;  %v2004_v31 = vpop.eup %1555 }
 0x242   :  { %409 = vperm.xlu1 %1526, %v1981_v7   ;;  %v2007_v59 = vpop.eup %1557 }
 0x246   :  { %412 = vperm.xlu1 %1526, %v1990_v62  }
 0x24a   :  { %786 = vperm.xlu1 %1526, %v1995_v13  }
 0x24e   :  { %789 = vperm.xlu1 %1526, %v1998_v55  }
 0x252   :  { %792 = vperm.xlu1 %1526, %v2001_v29  }
 0x256   :  { %798 = vperm.xlu1 %1526, %v2004_v31  }
 0x25a   :  { %804 = vperm.xlu1 %1526, %v2007_v59  }
 0x2b0   :  { %v395_v35 = vpop.permute.xlu0 %394 }
 0x2b1   :  { %v398_v53 = vpop.permute.xlu1 %397  ;;  %v420_v40 = vrot.slane %v395_v35, %v1831_v41 }
 0x2b2   :  { %v424_v61 = vrot.slane %v398_v53, %v1831_v41 }
 0x2b4   :  { %v449_v42 = vsel %vm301_vm2, %v424_v61, %v420_v40  ;;  %v416_v1 = vpop.permute.xlu0 %415 }
 0x2b5   :  { %v401_v10 = vpop.permute.xlu1 %400  ;;  %v448_v26 = vrot.slane %v416_v1, %v1831_v41 }
 0x2b6   :  { %v428_v48 = vrot.slane %v401_v10, %v1831_v41 }
 0x2b8   :  { %v450_v20 = vsel %vm303_vm3, %v428_v48, %v449_v42 }
 0x2b9   :  { %v404_v37 = vpop.permute.xlu1 %403 }
 0x2ba   :  { %v432_v18 = vrot.slane %v404_v37, %v1831_v41 }
 0x2bc   :  { %v451_v56 = vsel %vm305_vm4, %v432_v18, %v450_v20 }
 0x2bd   :  { %v407_v57 = vpop.permute.xlu1 %406 }
 0x2be   :  { %v436_v54 = vrot.slane %v407_v57, %v1831_v41  ;;  %v796_v57 = vpop.permute.xlu0 %795 }
 0x2bf   :  { %v824_v1 = vrot.slane %v796_v57, %v1831_v41 }
 0x2c0   :  { %v452_v9 = vsel %vm307_vm5, %v436_v54, %v451_v56 }
 0x2c1   :  { %v410_v11 = vpop.permute.xlu1 %409 }
 0x2c2   :  { %v440_v63 = vrot.slane %v410_v11, %v1831_v41  ;;  %v802_v11 = vpop.permute.xlu0 %801 }
 0x2c4   :  { %v453_v36 = vsel %vm309_vm6, %v440_v63, %v452_v9 }
 0x2c5   :  { %v413_v47 = vpop.permute.xlu1 %412 }
 0x2c6   :  { %v444_v16 = vrot.slane %v413_v47, %v1831_v41  ;;  %v808_v9 = vpop.permute.xlu0 %807 }
 0x2c8   :  { %v454_v53 = vsel %vm311_vm7, %v444_v16, %v453_v36 }
 0x2c9   :  { %v787_v10 = vpop.permute.xlu1 %786  ;;  %v455_v37 = vsel %vm313_vm8, %v448_v26, %v454_v53  ;;  %v832_v26 = vrot.slane %v802_v11, %v1831_v41 }
 0x2ca   :  { %v457_v35 = vsel %vm316_vm9, %v455_v37, 0.0  ;;  %v812_v48 = vrot.slane %v787_v10, %v1831_v41  ;;  %v840_v10 = vrot.slane %v808_v9, %v1831_v41 }
 0x2cb   :  { %458 = vadd.xlane.f32.xlu1 %v457_v35 }
 0x2cd   :  { %v790_v40 = vpop.permute.xlu1 %789 }
 0x2ce   :  { %v816_v61 = vrot.slane %v790_v40, %v1831_v41 }
 0x2d0   :  { %v841_v42 = vsel %vm301_vm2, %v816_v61, %v812_v48 }
 0x2d1   :  { %v793_v18 = vpop.permute.xlu1 %792 }
 0x2d2   :  { %v820_v54 = vrot.slane %v793_v18, %v1831_v41 }
 0x2d4   :  { %v842_v63 = vsel %vm303_vm3, %v820_v54, %v841_v42 }
 0x2d5   :  { %v799_v20 = vpop.permute.xlu1 %798  ;;  %v843_v47 = vsel %vm305_vm4, %v824_v1, %v842_v63 }
 0x2d6   :  { %v828_v56 = vrot.slane %v799_v20, %v1831_v41 }
 0x2d8   :  { %v844_v16 = vsel %vm307_vm5, %v828_v56, %v843_v47 }
 0x2d9   :  { %v805_v36 = vpop.permute.xlu1 %804  ;;  %v845_v37 = vsel %vm309_vm6, %v832_v26, %v844_v16 }
 0x2da   :  { %v836_v53 = vrot.slane %v805_v36, %v1831_v41 }
 0x2dc   :  { %v846_v35 = vsel %vm311_vm7, %v836_v53, %v845_v37 }
 0x2dd   :  { %v847_v57 = vsel %vm313_vm8, %v840_v10, %v846_v35 }
 0x2de   :  { %v849_v40 = vsel %vm316_vm9, %v847_v57, 0.0 }
 0x2df   :  { %850 = vadd.xlane.f32.xlu0 %v849_v40 }
 0x358   :  { %v459_v61 = vpop.xlane.xlu1 %458 }
 0x359   :  { %v472_v48 = vrot.slane %v459_v61, %v1906_v22  ;;  %v468_v18 = vrot.slane %v459_v61, %v1903_v17  ;;  %v476_v11 = vrot.slane %v459_v61, %v1912_v24  ;;  %v464_v54 = vrot.slane %v459_v61, %v1708_v19 }
 0x35a   :  { %v480_v41 = vrot.slane %v459_v61, %v1921_v39  ;;  %v484_v42 = vrot.slane %v459_v61, %v1926_v51  ;;  %v488_v63 = vrot.slane %v459_v61, %v1935_v43 }
 0x35b   :  { %1559 = vrcp.f32 %v472_v48 }
 0x35c   :  { %1561 = vrcp.f32 %v468_v18 }
 0x35d   :  { %1563 = vrcp.f32 %v476_v11 }
 0x35e   :  { %1565 = vrcp.f32 %v464_v54 }
 0x35f   :  { %1567 = vrcp.f32 %v480_v41 }
 0x360   :  { %1569 = vrcp.f32 %v484_v42 }
 0x361   :  { %1571 = vrcp.f32 %v488_v63 }
 0x365   :  { %v1560_v1 = vpop.eup %1559 }
 0x366   :  { %v1562_v20 = vpop.eup %1561  ;;  %v506_v56 = vmul.f32 %v1560_v1, %v1955_v25  ;;  %v492_v25 = vrot.slane %v459_v61, %v1909_v23 }
 0x367   :  { %v1564_v47 = vpop.eup %1563  ;;  %v504_v9 = vmul.f32 %v1562_v20, %v1948_v34 }
 0x368   :  { %v1566_v16 = vpop.eup %1565  ;;  %529 = vperm.xlu1 %1526, %v506_v56   ;;  %v508_v53 = vmul.f32 %v1564_v47, %v1964_v49  ;;  %v1152_v56 = vld [vmem:[%s2318_s3 + $0x20] sm:$0xff]  ;;  %v1153_v47 = vld [vmem:[%s2318_s3 + $0x28] sm:$0xff] }
 0x369   :  { %524 = vperm.xlu0 %1525, %v504_v9   ;;  %v502_v26 = vmul.f32 %v1566_v16, %v1946_v33  ;;  %v1568_v36 = vpop.eup %1567  ;;  %v1487_v9 = vpack.c.bf16 %v1153_v47, %v1152_v56  ;;  %v1154_v16 = vld [vmem:[%s2318_s3 + $0x30] sm:$0xff] }
 0x36a   :  { %v1570_v10 = vpop.eup %1569  ;;  %v510_v34 = vmul.f32 %v1568_v36, %v1972_v0 }
 0x36b   :  { %v1572_v48 = vpop.eup %1571  ;;  %v512_v33 = vmul.f32 %v1570_v10, %v1981_v7  ;;  %v1157_v10 = vld [vmem:[%s2318_s3 + $0x48] sm:$0xff] }
 0x36c   :  { %v851_v37 = vpop.xlane.xlu0 %850  ;;  %519 = vperm.xlu1 %1526, %v502_v26   ;;  %v1155_v26 = vld [vmem:[%s2318_s3 + $0x38] sm:$0xff] }
 0x36d   :  { %534 = vperm.xlu0 %1525, %v508_v53   ;;  %v856_v35 = vrot.slane %v851_v37, %v1708_v19  ;;  %v860_v57 = vrot.slane %v851_v37, %v1903_v17  ;;  %v864_v40 = vrot.slane %v851_v37, %v1906_v22  ;;  %v868_v49 = vrot.slane %v851_v37, %v1912_v24  ;;  %v1156_v53 = vld [vmem:[%s2318_s3 + $0x40] sm:$0xff] }
 0x36e   :  { %v514_v19 = vmul.f32 %v1572_v48, %v1990_v62  ;;  %v872_v17 = vrot.slane %v851_v37, %v1921_v39  ;;  %v876_v0 = vrot.slane %v851_v37, %v1926_v51  ;;  %v880_v22 = vrot.slane %v851_v37, %v1935_v43 }
 0x36f   :  { %1573 = vrcp.f32 %v856_v35  ;;  %v884_v61 = vrot.slane %v851_v37, %v1909_v23  ;;  %v1490_v36 = vpack.c.bf16 %v1155_v26, %v1154_v16  ;;  %v1493_v37 = vpack.c.bf16 %v1157_v10, %v1156_v53  ;;  %v1158_v35 = vld [vmem:[%s2318_s3 + $0x50] sm:$0xff] }
 0x370   :  { %539 = vperm.xlu1 %1526, %v510_v34   ;;  %1575 = vrcp.f32 %v860_v57  ;;  %v1159_v57 = vld [vmem:[%s2318_s3 + $0x58] sm:$0xff]  ;;  %v1160_v34 = vld [vmem:[%s2318_s3 + $0x60] sm:$0xff] }
 0x371   :  { %544 = vperm.xlu0 %1525, %v512_v33   ;;  %1577 = vrcp.f32 %v492_v25  ;;  %v1496_v25 = vpack.c.bf16 %v1159_v57, %v1158_v35 }
 0x372   :  { %1579 = vrcp.f32 %v864_v40  ;;  %v1161_v40 = vld [vmem:[%s2318_s3 + $0x68] sm:$0xff] }
 0x373   :  { %1581 = vrcp.f32 %v868_v49  ;;  %v1499_v48 = vpack.c.bf16 %v1161_v40, %v1160_v34 }
 0x374   :  { %549 = vperm.xlu1 %1526, %v514_v19   ;;  %1583 = vrcp.f32 %v872_v17 }
 0x375   :  { %1585 = vrcp.f32 %v876_v0 }
 0x376   :  { %1587 = vrcp.f32 %v880_v22 }
 0x377   :  { %1589 = vrcp.f32 %v884_v61 }
 0x379   :  { %v1574_v7 = vpop.eup %1573 }
 0x37a   :  { %v1576_v18 = vpop.eup %1575  ;;  %v894_v11 = vmul.f32 %v1574_v7, %v1995_v13 }
 0x37b   :  { %v1578_v24 = vpop.eup %1577  ;;  %v896_v62 = vmul.f32 %v1576_v18, %v1998_v55 }
 0x37c   :  { %v1580_v54 = vpop.eup %1579  ;;  %911 = vperm.xlu0 %1525, %v894_v11   ;;  %v516_v39 = vmul.f32 %v1578_v24, %v1958_v46 }
 0x37d   :  { %916 = vperm.xlu1 %1526, %v896_v62   ;;  %v1582_v51 = vpop.eup %1581  ;;  %v898_v43 = vmul.f32 %v1580_v54, %v2001_v29  ;;  %v1149_v29 = vld [vmem:[%s2318_s3 + $0x8] sm:$0xff] }
 0x37e   :  { %v1584_v41 = vpop.eup %1583  ;;  %v900_v23 = vmul.f32 %v1582_v51, %v1970_v38  ;;  %v1148_v38 = vld [vmem:[%s2318_s3] sm:$0xff] }
 0x37f   :  { %v1586_v42 = vpop.eup %1585  ;;  %v902_v13 = vmul.f32 %v1584_v41, %v2004_v31  ;;  %v1481_v31 = vpack.c.bf16 %v1149_v29, %v1148_v38 }
 0x380   :  { %554 = vperm.xlu0 %1525, %v516_v39   ;;  %v1588_v63 = vpop.eup %1587  ;;  %v904_v55 = vmul.f32 %v1586_v42, %v1979_v2  ;;  %v1150_v2 = vld [vmem:[%s2318_s3 + $0x10] sm:$0xff]  ;;  %v1013_v42 = vrot.slane %v1696_v8, 1 }
 0x381   :  { %921 = vperm.xlu1 %1526, %v898_v43   ;;  %v1590_v1 = vpop.eup %1589  ;;  %v906_v20 = vmul.f32 %v1588_v63, %v2007_v59  ;;  %v1151_v59 = vld [vmem:[%s2318_s3 + $0x18] sm:$0xff]  ;;  %1482 = vmatpush1.bf16.msra.mxu1 %v1481_v31 }
 0x382   :  { %v908_v46 = vmul.f32 %v1590_v1, %v1988_v12  ;;  %v1484_v12 = vpack.c.bf16 %v1151_v59, %v1150_v2  ;;  %1483 = vmatprep.subr.bf16.mxu1 %v1617_v3  ;;  %v1017_v2 = vrot.slane %v1696_v8, 5 }
 0x384   :  { %926 = vperm.xlu0 %1525, %v900_v23  }
 0x385   :  { %931 = vperm.xlu1 %1526, %v902_v13   ;;  %1485 = vmatpush1.bf16.msra.mxu1 %v1484_v12 }
 0x386   :  { %1486 = vmatprep.subr.bf16.mxu1 %v1617_v3 }
 0x388   :  { %936 = vperm.xlu0 %1525, %v904_v55  }
 0x389   :  { %941 = vperm.xlu1 %1526, %v906_v20   ;;  %1488 = vmatpush1.bf16.msra.mxu1 %v1487_v9 }
 0x38a   :  { %1489 = vmatprep.subr.bf16.mxu1 %v1617_v3 }
 0x38c   :  { %946 = vperm.xlu0 %1525, %v908_v46  }
 0x38d   :  { %1491 = vmatpush1.bf16.msra.mxu1 %v1490_v36 }
 0x38e   :  { %1492 = vmatprep.subr.bf16.mxu1 %v1617_v3 }
 0x391   :  { %1494 = vmatpush1.bf16.msra.mxu1 %v1493_v37 }
 0x392   :  { %1495 = vmatprep.subr.bf16.mxu1 %v1617_v3 }
 0x395   :  { %1497 = vmatpush1.bf16.msra.mxu1 %v1496_v25 }
 0x396   :  { %1498 = vmatprep.subr.bf16.mxu1 %v1617_v3 }
 0x399   :  { %1500 = vmatpush1.bf16.msra.mxu1 %v1499_v48 }
 0x39a   :  { %1501 = vmatprep.subr.bf16.mxu1 %v1617_v3 }
 0x3e7   :  { %v530_v33 = vpop.permute.xlu1 %529 }
 0x3e8   :  { %v559_v49 = vmul.f32 %v530_v33, %v1724_v30  ;;  %v525_v19 = vpop.permute.xlu0 %524  ;;  %v1014_v30 = vrot.slane %v1696_v8, 2 }
 0x3e9   :  { %v558_v17 = vmul.f32 %v525_v19, %v1730_v32 }
 0x3ea   :  { %v579_v0 = vsel %vm55_vm1, %v559_v49, 0.0 }
 0x3eb   :  { %v580_v22 = vrot.slane %v579_v0, 4  ;;  %v572_v7 = vsel %vm55_vm1, %v558_v17, 0.0  ;;  %v520_v61 = vpop.permute.xlu1 %519 }
 0x3ec   :  { %v573_v18 = vrot.slane %v572_v7, 4  ;;  %v535_v11 = vpop.permute.xlu0 %534  ;;  %v557_v24 = vmul.f32 %v520_v61, %v1718_v28 }
 0x3ed   :  { %v581_v62 = vadd.f32 %v580_v22, %v579_v0  ;;  %v560_v54 = vmul.f32 %v535_v11, %v1749_v45  ;;  %v1015_v45 = vrot.slane %v1696_v8, 3  ;;  %v1018_v0 = vrot.slane %v1696_v8, 6 }
 0x3ee   :  { %v574_v39 = vadd.f32 %v573_v18, %v572_v7  ;;  %v565_v51 = vsel %vm55_vm1, %v557_v24, 0.0 }
 0x3ef   :  { %v582_v43 = vrot.slane %v581_v62, 2  ;;  %v586_v32 = vsel %vm55_vm1, %v560_v54, 0.0  ;;  %v566_v41 = vrot.slane %v565_v51, 4  ;;  %v540_v23 = vpop.permute.xlu1 %539  ;;  %v2150_v54 = vld [vmem:[%s2315_s0] sm:$0xff] }
 0x3f0   :  { %v575_v13 = vrot.slane %v574_v39, 2  ;;  %v587_v63 = vrot.slane %v586_v32, 4  ;;  %v545_v55 = vpop.permute.xlu0 %544  ;;  %v561_v28 = vmul.f32 %v540_v23, %v1744_v44 }
 0x3f1   :  { %v583_v1 = vadd.f32 %v582_v43, %v581_v62  ;;  %v567_v20 = vadd.f32 %v566_v41, %v565_v51  ;;  %v562_v46 = vmul.f32 %v545_v55, %v1764_v52  ;;  %v1016_v52 = vrot.slane %v1696_v8, 4 }
 0x3f2   :  { %v576_v38 = vadd.f32 %v575_v13, %v574_v39  ;;  %v588_v29 = vadd.f32 %v587_v63, %v586_v32  ;;  %v593_v31 = vsel %vm55_vm1, %v561_v28, 0.0  ;;  %v1019_v39 = vrot.slane %v2150_v54, 7 }
 0x3f3   :  { %v584_v59 = vrot.slane %v583_v1, 1  ;;  %v568_v12 = vrot.slane %v567_v20, 2  ;;  %v600_v56 = vsel %vm55_vm1, %v562_v46, 0.0  ;;  %v594_v47 = vrot.slane %v593_v31, 4  ;;  %v550_v9 = vpop.permute.xlu1 %549 }
 0x3f4   :  { %v577_v16 = vrot.slane %v576_v38, 1  ;;  %v589_v44 = vrot.slane %v588_v29, 2  ;;  %v601_v26 = vrot.slane %v600_v56, 4  ;;  %v563_v36 = vmul.f32 %v550_v9, %v1789_v4 }
 0x3f5   :  { %v585_v53 = vadd.f32 %v584_v59, %v583_v1  ;;  %v569_v10 = vadd.f32 %v568_v12, %v567_v20  ;;  %v595_v37 = vadd.f32 %v594_v47, %v593_v31 }
 0x3f6   :  { %v578_v35 = vadd.f32 %v577_v16, %v576_v38  ;;  %v590_v57 = vadd.f32 %v589_v44, %v588_v29  ;;  %v602_v25 = vadd.f32 %v601_v26, %v600_v56  ;;  %v607_v34 = vsel %vm55_vm1, %v563_v36, 0.0 }
 0x3f7   :  { %v1030_v40 = vsub.f32 %v585_v53, %v1014_v30  ;;  %v570_v48 = vrot.slane %v569_v10, 1  ;;  %v596_v33 = vrot.slane %v595_v37, 2  ;;  %v608_v49 = vrot.slane %v607_v34, 4 }
 0x3f8   :  { %v1029_v19 = vsub.f32 %v578_v35, %v1013_v42  ;;  %v591_v4 = vrot.slane %v590_v57, 1  ;;  %v603_v17 = vrot.slane %v602_v25, 2 }
 0x3f9   :  { %v1038_v22 = vand.u32 2147483647, %v1030_v40  ;;  %v571_v7 = vadd.f32 %v570_v48, %v569_v10  ;;  %v597_v61 = vadd.f32 %v596_v33, %v595_v37  ;;  %v609_v18 = vadd.f32 %v608_v49, %v607_v34 }
 0x3fa   :  { %v1037_v11 = vand.u32 2147483647, %v1029_v19  ;;  %v592_v24 = vadd.f32 %v591_v4, %v590_v57  ;;  %v604_v62 = vadd.f32 %v603_v17, %v602_v25 }
 0x3fb   :  { %v2153_v51 = vrot.slane %v1038_v22, 6  ;;  %v1028_v43 = vsub.f32 %v571_v7, %v2150_v54  ;;  %v1068_v32 = vsel %vm301_vm2, %v578_v35, %v571_v7  ;;  %v598_v41 = vrot.slane %v597_v61, 1  ;;  %v912_v23 = vpop.permute.xlu0 %911 }
 0x3fc   :  { %v1104_v13 = vrot.slane %v1037_v11, 7  ;;  %v1031_v63 = vsub.f32 %v592_v24, %v1015_v45  ;;  %v605_v55 = vrot.slane %v604_v62, 1  ;;  %v610_v28 = vrot.slane %v609_v18, 2  ;;  %v917_v1 = vpop.permute.xlu1 %916 }
 0x3fd   :  { %v1036_v20 = vand.u32 2147483647, %v1028_v43  ;;  %v599_v46 = vadd.f32 %v598_v41, %v597_v61  ;;  %v949_v38 = vmul.f32 %v912_v23, %v1713_v27  ;;  %v950_v29 = vmul.f32 %v917_v1, %v1758_v50 }
 0x3fe   :  { %v1039_v31 = vand.u32 2147483647, %v1031_v63  ;;  %v606_v59 = vadd.f32 %v605_v55, %v604_v62  ;;  %v611_v12 = vadd.f32 %v610_v28, %v609_v18  ;;  %v1069_v56 = vsel %vm303_vm3, %v585_v53, %v1068_v32 }
 0x3ff   :  { %v2163_v47 = vsel %vm301_vm2, %v1104_v13, %v1036_v20  ;;  %v1032_v9 = vsub.f32 %v599_v46, %v1016_v52  ;;  %v957_v16 = vsel %vm55_vm1, %v949_v38, 0.0  ;;  %v964_v44 = vsel %vm55_vm1, %v950_v29, 0.0  ;;  %v555_v26 = vpop.permute.xlu0 %554 }
 0x400   :  { %v2169_v36 = vrot.slane %v1039_v31, 5  ;;  %v1033_v27 = vsub.f32 %v606_v59, %v1017_v2  ;;  %v612_v50 = vrot.slane %v611_v12, 1  ;;  %v958_v10 = vrot.slane %v957_v16, 4  ;;  %v922_v37 = vpop.permute.xlu1 %921 }
 0x401   :  { %v1040_v53 = vand.u32 2147483647, %v1032_v9  ;;  %v965_v35 = vrot.slane %v964_v44, 4  ;;  %v564_v57 = vmul.f32 %v555_v26, %v1794_v5  ;;  %v951_v25 = vmul.f32 %v922_v37, %v1773_v58 }
 0x402   :  { %v1041_v34 = vand.u32 2147483647, %v1033_v27  ;;  %v2175_v40 = vadd.f32 %v612_v50, %v611_v12  ;;  %v959_v48 = vadd.f32 %v958_v10, %v957_v16  ;;  %v1070_v33 = vsel %vm305_vm4, %v592_v24, %v1069_v56 }
 0x403   :  { %v2178_v49 = vrot.slane %v1040_v53, 4  ;;  %v966_v19 = vadd.f32 %v965_v35, %v964_v44  ;;  %v614_v4 = vsel %vm55_vm1, %v564_v57, 0.0  ;;  %v971_v17 = vsel %vm55_vm1, %v951_v25, 0.0  ;;  %v927_v22 = vpop.permute.xlu0 %926 }
 0x404   :  { %v2182_v7 = vrot.slane %v1041_v34, 3  ;;  %v960_v61 = vrot.slane %v959_v48, 2  ;;  %v615_v5 = vrot.slane %v614_v4, 4  ;;  %v972_v18 = vrot.slane %v971_v17, 4  ;;  %v932_v58 = vpop.permute.xlu1 %931 }
 0x405   :  { %v967_v11 = vrot.slane %v966_v19, 2  ;;  %v952_v62 = vmul.f32 %v927_v22, %v1778_v60  ;;  %v953_v43 = vmul.f32 %v932_v58, %v1803_v14  ;;  %v1071_v24 = vsel %vm307_vm5, %v599_v46, %v1070_v33  ;;  %v1592_v58 = vld [vmem:[%s2316_s1 + $0x78] sm:$0xff]  ;;  %s1622_s1 = smov 32  }
 0x406   :  { %v961_v32 = vadd.f32 %v960_v61, %v959_v48  ;;  %v616_v41 = vadd.f32 %v615_v5, %v614_v4  ;;  %v973_v23 = vadd.f32 %v972_v18, %v971_v17  ;;  %v1072_v13 = vsel %vm309_vm6, %v606_v59, %v1071_v24 }
 0x407   :  { %v968_v63 = vadd.f32 %v967_v11, %v966_v19  ;;  %v978_v55 = vsel %vm55_vm1, %v952_v62, 0.0  ;;  %v985_v28 = vsel %vm55_vm1, %v953_v43, 0.0  ;;  %v937_v1 = vpop.permute.xlu0 %936  ;;  %v1073_v20 = vsel %vm311_vm7, %v2175_v40, %v1072_v13 }
 0x408   :  { %v962_v38 = vrot.slane %v961_v32, 1  ;;  %v617_v60 = vrot.slane %v616_v41, 2  ;;  %v974_v29 = vrot.slane %v973_v23, 2  ;;  %v979_v14 = vrot.slane %v978_v55, 4  ;;  %v942_v31 = vpop.permute.xlu1 %941 }
 0x409   :  { %v969_v46 = vrot.slane %v968_v63, 1  ;;  %v986_v12 = vrot.slane %v985_v28, 4  ;;  %v954_v56 = vmul.f32 %v937_v1, %v1808_v15  ;;  %v955_v59 = vmul.f32 %v942_v31, %v1817_v21 }
 0x40a   :  { %v963_v9 = vadd.f32 %v962_v38, %v961_v32  ;;  %v618_v16 = vadd.f32 %v617_v60, %v616_v41  ;;  %v975_v44 = vadd.f32 %v974_v29, %v973_v23  ;;  %v980_v26 = vadd.f32 %v979_v14, %v978_v55 }
 0x40b   :  { %v970_v27 = vadd.f32 %v969_v46, %v968_v63  ;;  %v987_v50 = vadd.f32 %v986_v12, %v985_v28  ;;  %v992_v10 = vsel %vm55_vm1, %v954_v56, 0.0  ;;  %v999_v37 = vsel %vm55_vm1, %v955_v59, 0.0  ;;  %v947_v34 = vpop.permute.xlu0 %946 }
 0x40c   :  { %v1044_v53 = vsub.f32 %v963_v9, %v2150_v54  ;;  %v619_v35 = vrot.slane %v618_v16, 1  ;;  %v976_v57 = vrot.slane %v975_v44, 1  ;;  %v981_v25 = vrot.slane %v980_v26, 2 }
 0x40d   :  { %v1045_v15 = vsub.f32 %v970_v27, %v1013_v42  ;;  %v1086_v21 = vsel %vm301_vm2, %v970_v27, %v963_v9  ;;  %v988_v48 = vrot.slane %v987_v50, 2  ;;  %v993_v33 = vrot.slane %v992_v10, 4 }
 0x40e   :  { %v2200_v19 = vand.u32 2147483647, %v1044_v53  ;;  %v977_v4 = vadd.f32 %v976_v57, %v975_v44  ;;  %v982_v17 = vadd.f32 %v981_v25, %v980_v26  ;;  %v1000_v22 = vrot.slane %v999_v37, 4 }
 0x40f   :  { %v1053_v61 = vand.u32 2147483647, %v1045_v15  ;;  %v989_v5 = vadd.f32 %v988_v48, %v987_v50  ;;  %v994_v18 = vadd.f32 %v993_v33, %v992_v10  ;;  %v956_v11 = vmul.f32 %v1592_v58, %v947_v34 }
 0x410   :  { %v1046_v42 = vsub.f32 %v977_v4, %v1014_v30  ;;  %v1087_v62 = vsel %vm303_vm3, %v977_v4, %v1086_v21  ;;  %v983_v43 = vrot.slane %v982_v17, 1  ;;  %v1001_v24 = vadd.f32 %v1000_v22, %v999_v37 }
 0x411   :  { %v1129_v32 = vrot.slane %v1053_v61, 7  ;;  %v990_v41 = vrot.slane %v989_v5, 1  ;;  %v995_v23 = vrot.slane %v994_v18, 2  ;;  %v1006_v13 = vsel %vm55_vm1, %v956_v11, 0.0  ;;  %v1164_v11 = vld [vmem:[%s2318_s3 + $0x80] sm:$0xff] }
 0x412   :  { %v1054_v63 = vand.u32 2147483647, %v1046_v42  ;;  %v984_v55 = vadd.f32 %v983_v43, %v982_v17  ;;  %v1002_v28 = vrot.slane %v1001_v24, 2  ;;  %v1007_v1 = vrot.slane %v1006_v13, 4  ;;  %v1165_v42 = vld [vmem:[%s2318_s3 + $0x88] sm:$0xff] }
 0x413   :  { %v991_v38 = vadd.f32 %v990_v41, %v989_v5  ;;  %v996_v60 = vadd.f32 %v995_v23, %v994_v18  ;;  %v620_v29 = vadd.f32 %v619_v35, %v618_v16  ;;  %v1034_v30 = vsub.f32 %v2175_v40, %v1018_v0  ;;  %v1249_v41 = vld [vmem:[%s2320_s5 + $0x8] sm:$0xff] }
 0x414   :  { %v1131_v14 = vrot.slane %v1054_v63, 6  ;;  %v1047_v31 = vsub.f32 %v984_v55, %v1015_v45  ;;  %v1003_v46 = vadd.f32 %v1002_v28, %v1001_v24  ;;  %v1008_v12 = vadd.f32 %v1007_v1, %v1006_v13  ;;  %v1166_v28 = vld [vmem:[%s2318_s3 + $0x90] sm:$0xff]  ;;  %v1167_v1 = vld [vmem:[%s2318_s3 + $0x98] sm:$0xff] }
 0x415   :  { %v1048_v56 = vsub.f32 %v991_v38, %v1016_v52  ;;  %v997_v59 = vrot.slane %v996_v60, 1  ;;  %v1074_v9 = vsel %vm313_vm8, %v620_v29, %v1073_v20  ;;  %v1035_v44 = vsub.f32 %v620_v29, %v1019_v39 }
 0x416   :  { %v1055_v16 = vand.u32 2147483647, %v1047_v31  ;;  %v1004_v26 = vrot.slane %v1003_v46, 1  ;;  %v1009_v27 = vrot.slane %v1008_v12, 2  ;;  %1075 = vrot.lane.b32.xlu1 %v1074_v9, %s1622_s1  ;;  %v1042_v40 = vand.u32 2147483647, %v1034_v30 }
 0x417   :  { %v1056_v50 = vand.u32 2147483647, %v1048_v56  ;;  %v998_v10 = vadd.f32 %v997_v59, %v996_v60  ;;  %v1043_v45 = vand.u32 2147483647, %v1035_v44  ;;  %v1107_v37 = vsel %vm303_vm3, %v2153_v51, %v2163_v47  ;;  %v1250_v44 = vld [vmem:[%s2320_s5 + $0x10] sm:$0xff] }
 0x418   :  { %v1133_v52 = vrot.slane %v1055_v16, 5  ;;  %v1005_v53 = vadd.f32 %v1004_v26, %v1003_v46  ;;  %v1010_v35 = vadd.f32 %v1009_v27, %v1008_v12  ;;  %v1109_v20 = vsel %vm305_vm4, %v2169_v36, %v1107_v37 }
 0x419   :  { %v1135_v57 = vrot.slane %v1056_v50, 4  ;;  %v1049_v25 = vsub.f32 %v998_v10, %v1017_v2  ;;  %v1111_v34 = vsel %vm307_vm5, %v2178_v49, %v1109_v20  ;;  %v1114_v15 = vrot.slane %v1042_v40, 2  ;;  %v1162_v2 = vld [vmem:[%s2318_s3 + $0x70] sm:$0xff]  ;;  %v1163_v49 = vld [vmem:[%s2318_s3 + $0x78] sm:$0xff] }
 0x41a   :  { %v1011_v21 = vrot.slane %v1010_v35, 1  ;;  %v1113_v48 = vsel %vm309_vm6, %v2182_v7, %v1111_v34  ;;  %v1116_v33 = vrot.slane %v1043_v45, 1  ;;  %v1088_v51 = vsel %vm305_vm4, %v984_v55, %v1087_v62 }
 0x41b   :  { %v1115_v47 = vsel %vm311_vm7, %v1114_v15, %v1113_v48  ;;  %v1089_v4 = vsel %vm307_vm5, %v991_v38, %v1088_v51  ;;  %v1050_v36 = vsub.f32 %v1005_v53, %v1018_v0  ;;  %v1057_v17 = vand.u32 2147483647, %v1049_v25 }
 0x41c   :  { %v1117_v7 = vsel %vm313_vm8, %v1116_v33, %v1115_v47  ;;  %v1012_v22 = vadd.f32 %v1011_v21, %v1010_v35  ;;  %v1090_v61 = vsel %vm309_vm6, %v998_v10, %v1089_v4  ;;  %v1130_v5 = vsel %vm301_vm2, %v1129_v32, %v2200_v19  ;;  %v1248_v32 = vld [vmem:[%s2320_s5] sm:$0xff] }
 0x41d   :  { %1118 = vrot.lane.b32.xlu1 %v1117_v7, %s1623_s19  ;;  %v1091_v8 = vsel %vm311_vm7, %v1005_v53, %v1090_v61  ;;  %v1058_v0 = vand.u32 2147483647, %v1050_v36  ;;  %v1132_v18 = vsel %vm303_vm3, %v1131_v14, %v1130_v5  ;;  %v1137_v58 = vrot.slane %v1057_v17, 3  ;;  %v1431_v10 = vld [vmem:[%s2321_s6] ss:$0 sm:$0xff]  ;;  %s1420_s19 = sshll.u32 %s1625_s2, 4  ;;  %s1421_s19 = int_to_ptr.vmem [resolvable:$true] %s1420_s19 }
 0x41e   :  { %v1092_v62 = vsel %vm313_vm8, %v1012_v22, %v1091_v8  ;;  %v1051_v19 = vsub.f32 %v1012_v22, %v1019_v39  ;;  %v1134_v43 = vsel %vm305_vm4, %v1133_v52, %v1132_v18  ;;  %v1502_v24 = vpack.c.bf16 %v1163_v49, %v1162_v2  ;;  %v1333_v35 = vld [vmem:[%s2322_s7] sm:$0x1]  ;;  %s1593_s6 = scalar_lea.vmem %s1421_s19, 16  ;;  %s1597_s20 = scalar_lea.vmem %s1421_s19, 32 }
 0x41f   :  { %1093 = vrot.lane.b32.xlu0 %v1092_v62, %s1624_s28  ;;  %v1136_v23 = vsel %vm307_vm5, %v1135_v57, %v1134_v43  ;;  %v1139_v13 = vrot.slane %v1058_v0, 2  ;;  %v1505_v39 = vpack.c.bf16 %v1165_v42, %v1164_v11  ;;  %v1511_v38 = vpack.c.bf16 %v1249_v41, %v1248_v32  ;;  %p1594_p0 = scmp.ne.s32.totalorder %s1421_s19, %s1593_s6  ;;  %p1598_p1 = scmp.lt.s32.totalorder %s1421_s19, %s1421_s19 }
 0x420   :  { %v1059_v63 = vand.u32 2147483647, %v1051_v19  ;;  %v1138_v55 = vsel %vm309_vm6, %v1137_v58, %v1136_v23  ;;  %1503 = vmatpush1.bf16.msra.mxu1 %v1502_v24  ;;  %v1508_v14 = vpack.c.bf16 %v1167_v1, %v1166_v28  ;;  %p1599_p2 = scmp.lt.s32.totalorder %s1597_s20, %s1593_s6 }
 0x421   :  { %1504 = vmatprep.subr.bf16.mxu1 %v1617_v3  ;;  %v1140_v29 = vsel %vm311_vm7, %v1139_v13, %v1138_v55  ;;  %1512 = vmatpush3.bf16.msra.mxu0 %v1511_v38 }
 0x422   :  { %v1141_v60 = vrot.slane %v1059_v63, 1  ;;  %1513 = vmatprep.subr.bf16.mxu0 %v1617_v3  ;;  %p1600_p3 = por %p1599_p2, %p1598_p1 }
 0x424   :  { %v1142_v30 = vsel %vm313_vm8, %v1141_v60, %v1140_v29  ;;  %1506 = vmatpush1.bf16.msra.mxu1 %v1505_v39  ;;  %p1601_p4 = pnand %p1600_p3, %p1594_p0 }
 0x425   :  { %1430 = vmatprep.mubr.msk.f32.mxu1 %vm55_vm1, %v1142_v30  ;;  %1507 = vmatprep.subr.bf16.mxu1 %v1617_v3  ;;  %v1251_v3 = vld [vmem:[%s2320_s5 + $0x18] sm:$0xff] }
 0x426   :  { %v1514_v16 = vpack.c.bf16 %v1251_v3, %v1250_v44 }
 0x428   :  { %1509 = vmatpush1.bf16.msra.mxu1 %v1508_v14  ;;  %1515 = vmatpush3.bf16.msra.mxu0 %v1514_v16 }
 0x429   :  { %1469 = vmatprep.subr.mxu0 %v1619_v6 }
 0x488   :  { %v1076_v31 = vpop.permute.xlu1 %1075 }
 0x489   :  { %v1143_v46 = vsel %vm55_vm1, %v2150_v54, %v1076_v31  ;;  %v1429_v54 = vld [vmem:[%s2319_s4] ss:$0 sm:$0xff] }
 0x48f   :  { %v1119_v56 = vpop.permute.xlu1 %1118 }
 0x491   :  { %v1094_v12 = vpop.permute.xlu0 %1093 }
 0x492   :  { %v1145_v59 = vsel %vm1144_vm10, %v1143_v46, %v1094_v12 }
 0x493   :  { %v1147_v9 = vsel %vm1146_vm11, %v1145_v59, %v1119_v56 }
 0x494   :  { %1242 = vmatmul.mubr.f32.vlgmr.msra.gmra.mrb[0].mxu1 %v1147_v9 }
 0x567   :  { %v1243_v26 = vpop.f32.mrb[0].mxu1 }
 0x568   :  { %v1244_v27 = vadd.f32 %v1429_v54, %v1243_v26  ;;  %v1245_v40 = vpop.f32.mrb[1].mxu1 }
 0x56a   :  { %v1247_v50 = vmax.f32 %v1244_v27, 0.0 }
 0x56c   :  { %1467 = vmatmul.mubr.msk.f32.vlgmr.msra.gmra.mrb[2].mxu0 %vm55_vm1, %v1247_v50 }
 0x56d   :  { %1471 = vmatprep.mubr.msk.f32.mxu0 %vm1618_vm0, %v1619_v6  ;;  %v1335_v6 = vstv %s2323_s8 }
 0x63f   :  { %v1328_v45 = vpop.f32.mrb[2].mxu0 }
 0x640   :  { %v1329_v37 = vadd.f32 %v1431_v10, %v1328_v45  ;;  %v1468_v52 = vpop.f32.mrb[3].mxu0 }
 0x642   :  { %v1332_v53 = vmax.f32 %v1329_v37, 0.0 }
 0x644   :  { %1470 = vmatpush3.xpose.msk.msra.mxu0 %vm55_vm1, %v1332_v53 }
 0x647   :  { %1472 = vmatmul.mubr.msk.f32.vlgmr.msra.gmra.mrb[4].mxu0 %vm55_vm1, %v1333_v35 }
 0x71a   :  { %v1408_v20 = vpop.f32.mrb[4].mxu0 }
 0x71b   :  { %v1409_v57 = vadd.f32 %v1408_v20, %v1335_v6  ;;  %v1473_v25 = vpop.f32.mrb[5].mxu0 }
 0x71d   :  { %1413 = vst.msk [vmem:[#allocation3] sm:$0x1] %vm1412_vm12, %v1409_v57 }
 0x71e   :  { %1604 = shalt.err (!%p1601_p4)
}
 0x71f   :  { %s1605_s8 = scalar_lea.hbm %s2324_s9, 16 }
 0x720   :  { %p1606_p5 = scmp.ne.s32.totalorder %s2324_s9, %s1605_s8  ;;  %p1609_p6 = scmp.lt.u32.totalorder %s1605_s8, %s2324_s9 }
 0x722   :  { %p1611_p7 = pnand %p1609_p6, %p1606_p5 }
 0x724   :  { %1614 = shalt.err (!%p1611_p7)
}
 0x725   :  { %1423 = dma.vmem_to_hbm [thread:$0]  %s1421_s19, 16, %s2324_s9, [#allocation4]  }
 0x726   :  { %1615 = dma.done.wait [#allocation4], 16  }
 0x727   :  { %1616 = vsyncadd [#allocation4], 4294967280 }
 0x728   :  { %1427 = vsyncpa [#allocation4], 1 }

</bundles_post_ra>
